<compile_context>
chip_gen: v5e
topology: v5e:2x2
jax: 0.10.0
libtpu: 0.0.40
codegen_flags: <defaults>
</compile_context>

<pallas_src>
import functools

import jax
import jax.numpy as jnp
from jax import lax
from jax.experimental import pallas as pl
from jax.experimental.pallas import tpu as pltpu

LANE = 128           # vreg lane width: last dim of the 2-D slab
CHUNK_ROWS = 64      # rows per in-kernel reduction chunk (64x128 f32 = 8 vregs)
FUSED_MAX_ROWS = 4096  # <= 2 MiB f32 slab -> single fused pass


def _round_up(v, m):
    return ((v + m - 1) // m) * m


@functools.lru_cache(maxsize=None)
def _tpu_config():
    """Generation-aware knobs: (tensorcores, max block rows, vmem limit bytes)."""
    try:
        kind = jax.devices()[0].device_kind.lower()
    except Exception:
        kind = ""
    if "v7" in kind:                      # 2 TCs, 64 MiB physical VMEM, 3.2 TB/s
        return 2, 8192, 48 * 1024 * 1024
    if "v6" in kind or "v5" in kind:      # 1 TC, 128 MiB physical VMEM
        return 1, 4096, 32 * 1024 * 1024
    return 1, 1024, None                  # unknown / older generations: conservative


# ---------------------------------------------------------------------------
# Single-pass fused kernel (slab fits in VMEM): load once, reduce, clip, store.
# ---------------------------------------------------------------------------
def _fused_kernel(x_ref, o_ref, *, n, fence, masked):
    rows = x_ref.shape[0]
    xf = x_ref[...].astype(jnp.float32)
    shift = jnp.mean(xf[0:1, :])          # pilot value for stable shifted variance
    d = xf - shift
    if masked:                            # ragged tail: exclude explicit pad zeros
        rid = lax.broadcasted_iota(jnp.int32, (rows, LANE), 0)
        lid = lax.broadcasted_iota(jnp.int32, (rows, LANE), 1)
        d = jnp.where(rid * LANE + lid < n, d, 0.0)
    sd = jnp.sum(d)
    sd2 = jnp.sum(d * d)
    inv_n = 1.0 / n
    mean = shift + sd * inv_n
    var = (sd2 - sd * sd * inv_n) / max(n - 1, 1)   # unbiased (PyTorch default)
    std = jnp.sqrt(jnp.maximum(var, 0.0))
    lo = mean - fence * std
    hi = mean + fence * std
    o_ref[...] = jnp.clip(xf, lo, hi).astype(o_ref.dtype)


# ---------------------------------------------------------------------------
# Pass 1 (large tensors): shifted per-lane partial sums.  Grid = (core, block):
# the core axis is "parallel" (megacore split on v7x), the block axis is
# "arbitrary" with one resident (8,128) accumulator pair per core.
# ---------------------------------------------------------------------------
def _stats_kernel(shift_ref, x_ref, sd_ref, sd2_ref, *,
                  br, bpc, nblocks, n_last, has_dups):
    c = pl.program_id(0)
    i = pl.program_id(1)

    @pl.when(i == 0)
    def _():
        sd_ref[...] = jnp.zeros_like(sd_ref)
        sd2_ref[...] = jnp.zeros_like(sd2_ref)

    blk = c * bpc + i
    shift = shift_ref[0]

    def accum(limit, nchunks):
        # Reduce `nchunks` chunks of (CHUNK_ROWS, LANE); running (8,128)
        # partials stay in vregs (no (br,128) temporaries in VMEM).
        def body(j, carry):
            sd, sd2 = carry
            r0 = pl.multiple_of(j * CHUNK_ROWS, CHUNK_ROWS)
            xf = x_ref[pl.ds(r0, CHUNK_ROWS), :].astype(jnp.float32)
            d = xf - shift
            if limit is not None:         # tail block only: block-local index mask
                rid = lax.broadcasted_iota(jnp.int32, (CHUNK_ROWS, LANE), 0)
                lid = lax.broadcasted_iota(jnp.int32, (CHUNK_ROWS, LANE), 1)
                local = (j * CHUNK_ROWS + rid) * LANE + lid
                d = jnp.where(local < limit, d, 0.0)
            d3 = d.reshape(CHUNK_ROWS // 8, 8, LANE)
            return sd + jnp.sum(d3, axis=0), sd2 + jnp.sum(d3 * d3, axis=0)

        z = jnp.zeros((8, LANE), jnp.float32)
        return lax.fori_loop(0, nchunks, body, (z, z))

    def add_full():                       # unmasked fast path (HBM-bound)
        sd, sd2 = accum(None, br // CHUNK_ROWS)
        sd_ref[...] += sd
        sd2_ref[...] += sd2

    def add_tail():                       # masked path: only the last block
        sd, sd2 = accum(n_last, pl.cdiv(n_last, CHUNK_ROWS * LANE))
        sd_ref[...] += sd
        sd2_ref[...] += sd2

    last_full = (n_last == br * LANE)
    if last_full and not has_dups:
        add_full()                                    # no runtime branch at all
    elif last_full:
        pl.when(blk < nblocks)(add_full)              # skip duplicated blocks
    elif not has_dups:
        pl.when(blk != nblocks - 1)(add_full)
        pl.when(blk == nblocks - 1)(add_tail)
    else:
        pl.when(blk < nblocks - 1)(add_full)
        pl.when(blk == nblocks - 1)(add_tail)


# ---------------------------------------------------------------------------
# Pass 2 (large tensors): elementwise clamp; bounds finalized in-kernel from
# the tiny per-lane partials (no XLA glue between the two passes).
# ---------------------------------------------------------------------------
def _clip_kernel(shift_ref, sd_ref, sd2_ref, x_ref, o_ref, *,
                 inv_n, inv_nm1, fence):
    shift = shift_ref[0]
    sd = jnp.sum(sd_ref[...])
    sd2 = jnp.sum(sd2_ref[...])
    mean = shift + sd * inv_n
    var = (sd2 - sd * sd * inv_n) * inv_nm1
    std = jnp.sqrt(jnp.maximum(var, 0.0))
    lo = mean - fence * std
    hi = mean + fence * std
    o_ref[...] = jnp.clip(x_ref[...].astype(jnp.float32), lo, hi).astype(o_ref.dtype)


@functools.partial(jax.jit, static_argnums=(1,))
def clip_outliers(x, fence):
    orig_shape = x.shape
    orig_dtype = x.dtype
    n = x.size
    if n == 0:
        return x
    fence = float(fence)
    # TODO(synk): integer dtypes round-trip via f32 and truncate on the final
    #             cast; torch's clamp against float stats would return floats.

    num_tc, max_rows, vmem_limit = _tpu_config()

    # Lane-dense (rows, 128) slab in the original dtype (free reshape when
    # n % 128 == 0; a single pad copy only for ragged sizes).
    rows = pl.cdiv(n, LANE)
    pad = rows * LANE - n
    flat = x.reshape(-1)
    if pad:
        # TODO(synk): the pad here and the [:n] slice below each copy the full
        # tensor for ragged sizes; a 1-D partial output block could save ~2n
        # bytes of HBM traffic but is layout-riskier, so it is not done here.
        flat = jnp.pad(flat, (0, pad))
    x2d = flat.reshape(rows, LANE)

    fused_max_rows = min(FUSED_MAX_ROWS, max_rows)

    if rows <= fused_max_rows:
        # -------- single fused pass: 2n HBM bytes, one launch ---------------
        out2d = pl.pallas_call(
            functools.partial(_fused_kernel, n=n, fence=fence, masked=pad != 0),
            out_shape=jax.ShapeDtypeStruct((rows, LANE), orig_dtype),
            compiler_params=pltpu.CompilerParams(vmem_limit_bytes=vmem_limit),
        )(x2d)
    else:
        # -------- two-pass streaming path -----------------------------------
        # Block rows: as large as the generation's VMEM budget allows, but
        # split so every TensorCore gets at least one block.
        if num_tc > 1:
            br = min(max_rows, _round_up(pl.cdiv(rows, num_tc), CHUNK_ROWS))
        else:
            br = min(max_rows, _round_up(rows, CHUNK_ROWS))
        nblocks = pl.cdiv(rows, br)
        num_cores = min(num_tc, nblocks)
        bpc = pl.cdiv(nblocks, num_cores)         # blocks per core
        has_dups = num_cores * bpc > nblocks      # odd block count on 2 cores
        n_last = n - (nblocks - 1) * br * LANE    # valid elements in last block

        # Pilot shift (mean of the first 128 elements) for a cancellation-free
        # shifted variance: var = (sum d^2 - (sum d)^2 / n) / (n - 1).
        shift_arr = jnp.mean(x2d[0].astype(jnp.float32)).reshape(1)

        if has_dups:
            x_index_map = lambda c, i: (jnp.minimum(c * bpc + i, nblocks - 1), 0)
        else:
            x_index_map = lambda c, i: (c * bpc + i, 0)

        sum_d, sum_d2 = pl.pallas_call(
            functools.partial(_stats_kernel, br=br, bpc=bpc, nblocks=nblocks,
                              n_last=n_last, has_dups=has_dups),
            out_shape=(
                jax.ShapeDtypeStruct((num_cores * 8, LANE), jnp.float32),
                jax.ShapeDtypeStruct((num_cores * 8, LANE), jnp.float32),
            ),
            grid=(num_cores, bpc),
            in_specs=[
                pl.BlockSpec(memory_space=pltpu.MemorySpace.SMEM),   # shift
                pl.BlockSpec((br, LANE), x_index_map),
            ],
            out_specs=(
                pl.BlockSpec((8, LANE), lambda c, i: (c, 0)),
                pl.BlockSpec((8, LANE), lambda c, i: (c, 0)),
            ),
            compiler_params=pltpu.CompilerParams(
                dimension_semantics=("parallel", "arbitrary"),
                vmem_limit_bytes=vmem_limit),
        )(shift_arr, x2d)

        out2d = pl.pallas_call(
            functools.partial(_clip_kernel, inv_n=1.0 / n,
                              inv_nm1=1.0 / max(n - 1, 1), fence=fence),
            out_shape=jax.ShapeDtypeStruct((rows, LANE), orig_dtype),
            grid=(nblocks,),
            in_specs=[
                pl.BlockSpec(memory_space=pltpu.MemorySpace.SMEM),   # shift
                pl.BlockSpec((num_cores * 8, LANE), lambda i: (0, 0)),
                pl.BlockSpec((num_cores * 8, LANE), lambda i: (0, 0)),
                pl.BlockSpec((br, LANE), lambda i: (i, 0)),
            ],
            out_specs=pl.BlockSpec((br, LANE), lambda i: (i, 0)),
            compiler_params=pltpu.CompilerParams(
                dimension_semantics=("parallel",),
                vmem_limit_bytes=vmem_limit),
        )(shift_arr, sum_d, sum_d2, x2d)

    out_flat = out2d.reshape(-1)
    if pad:
        out_flat = out_flat[:n]
    return out_flat.reshape(orig_shape)


class ClipOutliers:
    """JAX/Pallas equivalent of the PyTorch ClipOutliers module."""

    def __init__(self, fence):
        self.fence = fence

    def __call__(self, x):
        return clip_outliers(x, float(self.fence))

    def __repr__(self):
        return f"{self.__class__.__name__}(fence={self.fence})"


def _reference(x, fence):
    xf = x.astype(jnp.float32)
    mean = jnp.mean(xf)
    std = jnp.std(xf, ddof=1)
    return jnp.clip(xf, mean - fence * std, mean + fence * std).astype(x.dtype)


def _check(x, fence, atol, rtol):
    out = jax.block_until_ready(ClipOutliers(fence)(x))
    ref = _reference(x, fence)
    assert out.shape == x.shape and out.dtype == x.dtype
    assert jnp.allclose(out, ref, atol=atol, rtol=rtol), "mismatch vs reference"


if __name__ == "__main__":
    fence = 1.5
    k0, k1, k2, k3 = jax.random.split(jax.random.PRNGKey(0), 4)

    # Small NCHW input (fused single-pass path), with injected outliers.
    x0 = jax.random.normal(k0, (2, 4, 16, 16), dtype=jnp.float32) * 2.0
    x0 = x0.at[0, 0, 0, 0].set(50.0).at[1, 3, 5, 7].set(-40.0)
    _check(x0, fence, 1e-4, 1e-4)

    # Ragged small size (n % 128 != 0) + nonzero mean: fused masked path.
    x1 = jax.random.normal(k1, (3, 5, 7, 11), dtype=jnp.float32) + 7.0
    _check(x1, fence, 1e-4, 1e-4)

    # Large, 128-aligned: two-pass streaming path (unmasked stats fast path).
    x2 = jax.random.normal(k2, (8, 4, 128, 256), dtype=jnp.float32) * 3.0 + 1.0
    _check(x2, fence, 2e-3, 2e-3)

    # Large, ragged: two-pass path with masked tail block / partial windows.
    x3 = jax.random.normal(k3, (701, 999), dtype=jnp.float32) - 2.5
    _check(x3, fence, 2e-3, 2e-3)

    print("KERNEL_OK")
</pallas_src>

<mosaic_0001>
module attributes {stable_mosaic.version = 11 : i64} {
  func.func @_fused_kernel(%arg0: memref<16x128xf32, #tpu.memory_space<vmem>>, %arg1: memref<16x128xf32, #tpu.memory_space<vmem>>) attributes {dimension_semantics = [], scalar_prefetch = 0 : i64, scratch_operands = 0 : i64, tpu.core_type = #tpu.core_type<tc>} {
    %c0 = arith.constant 0 : index
    %c0_0 = arith.constant 0 : index
    %0 = vector.load %arg0[%c0, %c0_0] : memref<16x128xf32, #tpu.memory_space<vmem>>, vector<16x128xf32>
    %1 = vector.extract_strided_slice %0 {offsets = [0, 0], sizes = [1, 128], strides = [1, 1]} : vector<16x128xf32> to vector<1x128xf32>
    %2 = vector.shape_cast %1 : vector<1x128xf32> to vector<1x1x128xf32>
    %cst = arith.constant dense<0.000000e+00> : vector<1xf32>
    %3 = vector.multi_reduction <add>, %2, %cst [1, 2] : vector<1x1x128xf32> to vector<1xf32>
    %4 = vector.shape_cast %3 : vector<1xf32> to vector<1x1x1xf32>
    %5 = vector.extract %4[0, 0, 0] : f32 from vector<1x1x1xf32>
    %cst_1 = arith.constant 1.280000e+02 : f32
    %6 = arith.divf %5, %cst_1 : f32
    %7 = vector.broadcast %6 : f32 to vector<16x128xf32>
    %8 = arith.subf %0, %7 : vector<16x128xf32>
    %9 = vector.shape_cast %8 : vector<16x128xf32> to vector<1x16x128xf32>
    %cst_2 = arith.constant dense<0.000000e+00> : vector<1xf32>
    %10 = vector.multi_reduction <add>, %9, %cst_2 [1, 2] : vector<1x16x128xf32> to vector<1xf32>
    %11 = vector.shape_cast %10 : vector<1xf32> to vector<1x1x1xf32>
    %12 = vector.extract %11[0, 0, 0] : f32 from vector<1x1x1xf32>
    %13 = arith.mulf %8, %8 : vector<16x128xf32>
    %14 = vector.shape_cast %13 : vector<16x128xf32> to vector<1x16x128xf32>
    %cst_3 = arith.constant dense<0.000000e+00> : vector<1xf32>
    %15 = vector.multi_reduction <add>, %14, %cst_3 [1, 2] : vector<1x16x128xf32> to vector<1xf32>
    %16 = vector.shape_cast %15 : vector<1xf32> to vector<1x1x1xf32>
    %17 = vector.extract %16[0, 0, 0] : f32 from vector<1x1x1xf32>
    %cst_4 = arith.constant 4.8828125E-4 : f32
    %18 = arith.mulf %12, %cst_4 : f32
    %19 = arith.addf %6, %18 : f32
    %20 = arith.mulf %12, %12 : f32
    %cst_5 = arith.constant 4.8828125E-4 : f32
    %21 = arith.mulf %20, %cst_5 : f32
    %22 = arith.subf %17, %21 : f32
    %cst_6 = arith.constant 2.047000e+03 : f32
    %23 = arith.divf %22, %cst_6 : f32
    %cst_7 = arith.constant 0.000000e+00 : f32
    %24 = arith.maximumf %23, %cst_7 : f32
    %25 = math.sqrt %24 : f32
    %cst_8 = arith.constant 1.500000e+00 : f32
    %26 = arith.mulf %cst_8, %25 : f32
    %27 = arith.subf %19, %26 : f32
    %cst_9 = arith.constant 1.500000e+00 : f32
    %28 = arith.mulf %cst_9, %25 : f32
    %29 = arith.addf %19, %28 : f32
    %30 = vector.broadcast %27 : f32 to vector<16x128xf32>
    %31 = arith.maximumf %30, %0 : vector<16x128xf32>
    %32 = vector.broadcast %29 : f32 to vector<16x128xf32>
    %33 = arith.minimumf %32, %31 : vector<16x128xf32>
    %c0_10 = arith.constant 0 : index
    %c0_11 = arith.constant 0 : index
    %34 = vector.load %arg1[%c0_10, %c0_11] : memref<16x128xf32, #tpu.memory_space<vmem>>, vector<16x128xf32>
    tpu.vector_store %arg1[%c0_10, %c0_11], %33 {strides = array<i32>} : memref<16x128xf32, #tpu.memory_space<vmem>>, vector<16x128xf32>,
    return
  }
}

</mosaic_0001>

<bundles_post_ra>
// kernel: clip_outliers.1
= control target key start
LH: loop header
LB: loop body
LE: loop exit
PB: predicated region body
PF: predicated region fallthrough
CT: control target
= control target key end

     0   :  { %vm10_vm0 = vcmask 1040384   ;;  %v120_v2 = vmov 128.0   ;;  %v121_v24 = vmov 2047.0   ;;  %s122_s19 = smov 0.0   ;;  %s158_s0 = inlined_call_operand.vmem [shape: f32[16,128], index: 0, kind: input, shape index: {}]   ;;  %s159_s1 = inlined_call_operand.vmem [shape: f32[16,128], index: 1, kind: output, shape index: {}]  }
   0x1   :  { %v136_v0 = vld [vmem:[%s158_s0] sm:$0xff]  ;;  %114 = vrcp.f32 %v120_v2  ;;  %v142_v16 = vld [vmem:[%s158_s0 + $0x8] sm:$0xff] }
   0x2   :  { %v11_v1 = vsel %vm10_vm0, %v136_v0, 0.0  ;;  %116 = vrcp.f32 %v121_v24 }
   0x3   :  { %12 = vadd.xlane.f32.xlu0 %v11_v1 }
   0x7   :  { %v115_v3 = vpop.eup %114 }
   0x8   :  { %v22_v4 = vmul.f32 128.0, %v115_v3  ;;  %vm26_vm1 = vweird.f32 %v115_v3  ;;  %v117_v25 = vpop.eup %116 }
   0x9   :  { %v61_v26 = vmul.f32 2047.0, %v117_v25  ;;  %vm65_vm2 = vweird.f32 %v117_v25 }
   0xa   :  { %v23_v5 = vsub.f32 1.0, %v22_v4 }
   0xb   :  { %v62_v29 = vsub.f32 1.0, %v61_v26 }
   0xc   :  { %v24_v9 = vmul.f32 %v115_v3, %v23_v5 }
   0xd   :  { %v63_v35 = vmul.f32 %v117_v25, %v62_v29 }
   0xe   :  { %v25_v12 = vadd.f32 %v115_v3, %v24_v9 }
   0xf   :  { %v64_v40 = vadd.f32 %v117_v25, %v63_v35 }
  0x10   :  { %v27_v15 = vsel %vm26_vm1, %v115_v3, %v25_v12 }
  0x11   :  { %v66_v44 = vsel %vm65_vm2, %v117_v25, %v64_v40 }
  0x76   :  { %v13_v6 = vpop.xlane.xlu0 %12 }
  0x77   :  { %v14_v7 = vrot.slane %v13_v6, 4 }
  0x79   :  { %v15_v8 = vadd.f32 %v14_v7, %v13_v6 }
  0x7b   :  { %v16_v10 = vrot.slane %v15_v8, 2 }
  0x7d   :  { %v17_v11 = vadd.f32 %v16_v10, %v15_v8 }
  0x7f   :  { %v18_v13 = vrot.slane %v17_v11, 1 }
  0x81   :  { %v19_v14 = vadd.f32 %v18_v13, %v17_v11 }
  0x83   :  { %99 = vpush %v19_v14 }
  0x84   :  { %101 = vpush %v27_v15 }
  0xb4   :  { %s100_s8 = spop %99 }
  0xb5   :  { %s102_s9 = spop %101 }
  0xb6   :  { %s144_s12 = smul.f32 %s102_s9, %s100_s8 }
  0xb8   :  { %v30_v17 = vstv %s144_s12 }
  0xb9   :  { %v31_v18 = vsub.f32 %v136_v0, %v30_v17  ;;  %v32_v19 = vsub.f32 %v142_v16, %v30_v17 }
  0xbb   :  { %v33_v20 = vadd.f32 %v32_v19, %v31_v18  ;;  %v43_v21 = vmul.f32 %v31_v18, %v31_v18  ;;  %v44_v22 = vmul.f32 %v32_v19, %v32_v19 }
  0xbd   :  { %34 = vadd.xlane.f32.xlu0 %v33_v20  ;;  %v45_v23 = vadd.f32 %v44_v22, %v43_v21 }
  0xbf   :  { %46 = vadd.xlane.f32.xlu1 %v45_v23 }
 0x130   :  { %v35_v27 = vpop.xlane.xlu0 %34 }
 0x131   :  { %v36_v28 = vrot.slane %v35_v27, 4 }
 0x132   :  { %v47_v30 = vpop.xlane.xlu1 %46 }
 0x133   :  { %v37_v31 = vadd.f32 %v36_v28, %v35_v27  ;;  %v48_v32 = vrot.slane %v47_v30, 4 }
 0x135   :  { %v38_v33 = vrot.slane %v37_v31, 2  ;;  %v49_v34 = vadd.f32 %v48_v32, %v47_v30 }
 0x137   :  { %v39_v36 = vadd.f32 %v38_v33, %v37_v31  ;;  %v50_v37 = vrot.slane %v49_v34, 2 }
 0x139   :  { %v51_v38 = vadd.f32 %v50_v37, %v49_v34  ;;  %v40_v39 = vrot.slane %v39_v36, 1 }
 0x13b   :  { %v41_v41 = vadd.f32 %v40_v39, %v39_v36  ;;  %v52_v42 = vrot.slane %v51_v38, 1 }
 0x13d   :  { %103 = vpush %v41_v41  ;;  %v53_v43 = vadd.f32 %v52_v42, %v51_v38 }
 0x13f   :  { %105 = vpush %v53_v43 }
 0x140   :  { %107 = vpush %v66_v44 }
 0x16e   :  { %s104_s0 = spop %103 }
 0x16f   :  { %s57_s13 = smul.f32 %s104_s0, %s104_s0 }
 0x170   :  { %s106_s15 = spop %105  ;;  %s55_s21 = smul.f32 0.00048828125, %s104_s0 }
 0x171   :  { %s58_s14 = smul.f32 0.00048828125, %s57_s13  ;;  %s108_s16 = spop %107 }
 0x172   :  { %s56_s23 = sadd.f32 %s55_s21, %s144_s12 }
 0x173   :  { %s59_s17 = ssub.f32 %s106_s15, %s58_s14 }
 0x175   :  { %s68_s18 = smul.f32 %s108_s16, %s59_s17 }
 0x177   :  { %s69_s20 = smax.f32 %s122_s19, %s68_s18 }
 0x178   :  { %v70_v45 = vstv %s69_s20 }
 0x179   :  { %118 = vrsqrt.f32 %v70_v45  ;;  %vm78_vm3 = vcmp.eq.f32.partialorder %v70_v45, inf  ;;  %v81_v53 = vand.u32 2147483648, %v70_v45  ;;  %vm80_vm4 = vcmp.eq.f32.partialorder %v70_v45, 0.0 }
 0x17f   :  { %v119_v46 = vpop.eup %118 }
 0x180   :  { %v72_v47 = vmul.f32 %v119_v46, %v70_v45 }
 0x182   :  { %v73_v48 = vmul.f32 %v119_v46, %v72_v47 }
 0x184   :  { %v74_v49 = vmul.f32 0.5, %v73_v48 }
 0x186   :  { %v75_v50 = vsub.f32 1.5, %v74_v49 }
 0x188   :  { %v76_v51 = vmul.f32 %v119_v46, %v75_v50 }
 0x18a   :  { %v77_v52 = vmul.f32 %v76_v51, %v70_v45 }
 0x18c   :  { %v79_v54 = vsel %vm78_vm3, %v70_v45, %v77_v52 }
 0x18d   :  { %v82_v55 = vsel %vm80_vm4, %v81_v53, %v79_v54 }
 0x18e   :  { %109 = vpush %v82_v55 }
 0x1bf   :  { %s110_s22 = spop %109 }
 0x1c0   :  { %s84_s24 = smul.f32 1.5, %s110_s22 }
 0x1c2   :  { %s85_s25 = ssub.f32 %s56_s23, %s84_s24 }
 0x1c3   :  { %s86_s26 = sadd.f32 %s84_s24, %s56_s23 }
 0x1c4   :  { %v87_v56 = vstv %s85_s25 }
 0x1c5   :  { %v88_v57 = vmax.f32 %v87_v56, %v136_v0  ;;  %v89_v58 = vmax.f32 %v87_v56, %v142_v16  ;;  %v90_v59 = vstv %s86_s26 }
 0x1c7   :  { %v91_v60 = vmin.f32 %v90_v59, %v88_v57  ;;  %v92_v61 = vmin.f32 %v90_v59, %v89_v58 }
 0x1c9   :  { %93 = vst [vmem:[%s159_s1] sm:$0xff] %v91_v60 }
 0x1ca   :  { %94 = vst [vmem:[%s159_s1 + $0x8] sm:$0xff] %v92_v61 }

</bundles_post_ra>
